<compile_context>
chip_gen: v7x
topology: tpu7x:2x2x1
jax: 0.10.0
libtpu: 0.0.40
codegen_flags: <defaults>
</compile_context>

<pallas_src>
import functools

import jax
import jax.numpy as jnp
from jax.experimental import pallas as pl
from jax.experimental.pallas import tpu as pltpu


def composer_kernel(lc_ref, lh_ref, rc_ref, rh_ref, wl_ref, wr_ref, b_ref,
                    c_ref, h_ref):
    # MXU operands in bf16 (no-op cast when the state is already bf16),
    # f32 accumulation.
    lh = lh_ref[...].astype(jnp.bfloat16)
    rh = rh_ref[...].astype(jnp.bfloat16)
    z = jnp.dot(lh, wl_ref[...], preferred_element_type=jnp.float32)
    z = z + jnp.dot(rh, wr_ref[...], preferred_element_type=jnp.float32)
    z = z + b_ref[...]                              # f32 bias, broadcast over rows

    m = lh_ref.shape[1]
    # Static 128-lane-aligned slices -> land on vreg boundaries, no relayout.
    # sigmoid(x) = 0.5*tanh(0.5*x) + 0.5  -> one EUP pass per gate instead of exp+rcp.
    i_gate  = 0.5 * jnp.tanh(0.5 * z[:, 0 * m:1 * m]) + 0.5
    lf_gate = 0.5 * jnp.tanh(0.5 * z[:, 1 * m:2 * m]) + 0.5
    rf_gate = 0.5 * jnp.tanh(0.5 * z[:, 2 * m:3 * m]) + 0.5
    update  = jnp.tanh(z[:, 3 * m:4 * m])

    # Cell state accumulated in f32 regardless of the I/O dtype.
    c = (i_gate * update
         + lf_gate * lc_ref[...].astype(jnp.float32)
         + rf_gate * rc_ref[...].astype(jnp.float32))
    c_ref[...] = c.astype(c_ref.dtype)
    h_ref[...] = jnp.tanh(c).astype(h_ref.dtype)


def _round_up(x, m):
    return ((x + m - 1) // m) * m


@functools.partial(jax.jit, static_argnames=("block_b",))
def binary_tree_composer(lc, lh, rc, rh, wl, wr, b, *, block_b=512):
    """Fused TreeLSTM binary composer.

    lc, lh, rc, rh : (B, M) child cell/hidden states (f32 or bf16; bf16 preferred —
                     the tree loop should carry bf16 state so no wrapper casts occur)
    wl, wr         : (M, 4M) packed Linear weights, already transposed to (in, out),
                     column blocks ordered [i | lf | rf | u]
    b              : (1, 4M) packed bias (sum of the lh/rh Linear biases), f32
    Returns (c, h), each (B, M) in the state dtype.
    """
    B, M = lh.shape
    out_dtype = lh.dtype

    if B == 0:
        z = jnp.zeros((0, M), dtype=out_dtype)
        return z, z

    # Pack once per call; callers that loop over tree levels should pre-cast weights
    # to bf16 so this is a no-op.
    wl_b = wl.astype(jnp.bfloat16)
    wr_b = wr.astype(jnp.bfloat16)
    bias = b.astype(jnp.float32)

    state_bytes = jnp.dtype(out_dtype).itemsize
    # Minimum legal row tiling for this dtype (8 for 32-bit, 16 for bf16).
    row_align = 8 if state_bytes >= 4 else 16

    if B <= max(block_b, row_align):
        if B >= 2 * row_align:
            # Split the batch into >= 2 grid steps so v7x's second TensorCore
            # (and megacore on other parts) gets work.
            tb = _round_up(pl.cdiv(B, 2), row_align)
        else:
            # Tiny batch: single full-extent block — no padded rows, no wasted work.
            tb = B
    else:
        tb = max(row_align, (block_b // row_align) * row_align)

    grid = (pl.cdiv(B, tb),)   # ragged tail handled by Pallas partial-block masking

    state_spec = pl.BlockSpec((tb, M), lambda i: (i, 0))
    w_spec = pl.BlockSpec((M, 4 * M), lambda i: (0, 0))   # VMEM-resident weights
    b_spec = pl.BlockSpec((1, 4 * M), lambda i: (0, 0))

    cost = pl.CostEstimate(
        flops=2 * B * (2 * M) * (4 * M),
        transcendentals=5 * B * M,                    # 5 tanh passes per row
        bytes_accessed=(6 * B * M * state_bytes       # 4 inputs + 2 outputs
                        + 2 * M * 4 * M * 2           # bf16 packed weights
                        + 4 * M * 4),                 # f32 packed bias
    )

    c, h = pl.pallas_call(
        composer_kernel,
        out_shape=(jax.ShapeDtypeStruct((B, M), out_dtype),
                   jax.ShapeDtypeStruct((B, M), out_dtype)),
        grid=grid,
        in_specs=[state_spec, state_spec, state_spec, state_spec,
                  w_spec, w_spec, b_spec],
        out_specs=(state_spec, state_spec),
        compiler_params=pltpu.CompilerParams(
            dimension_semantics=("parallel",)),
        cost_estimate=cost,
    )(lc, lh, rc, rh, wl_b, wr_b, bias)

    return c, h


def pack_composer_params(ilh, irh, lflh, lfrh, rflh, rfrh, ulh, urh):
    """Pack the 8 nn.Linear params. Each arg is (weight, bias) with weight in
    PyTorch (out_dim, in_dim) layout. Returns (wl, wr, b)."""
    wl = jnp.concatenate([ilh[0].T, lflh[0].T, rflh[0].T, ulh[0].T], axis=1)
    wr = jnp.concatenate([irh[0].T, lfrh[0].T, rfrh[0].T, urh[0].T], axis=1)
    b = jnp.concatenate([ilh[1] + irh[1], lflh[1] + lfrh[1],
                         rflh[1] + rfrh[1], ulh[1] + urh[1]])[None, :]
    return wl, wr, b


def reference(lc, lh, rc, rh, wl, wr, b):
    f32 = lambda a: a.astype(jnp.float32)
    z = f32(lh) @ wl + f32(rh) @ wr + b
    M = lh.shape[1]
    i  = jax.nn.sigmoid(z[:, 0 * M:1 * M])
    lf = jax.nn.sigmoid(z[:, 1 * M:2 * M])
    rf = jax.nn.sigmoid(z[:, 2 * M:3 * M])
    u  = jnp.tanh(z[:, 3 * M:4 * M])
    c = i * u + lf * f32(lc) + rf * f32(rc)
    return c, jnp.tanh(c)


if __name__ == "__main__":
    # Small shapes consistent with the module: batch=8 nodes, mem_dim=128.
    B, MEM = 8, 128

    key = jax.random.PRNGKey(0)
    ks = jax.random.split(key, 12)

    # Deterministic synthetic parameters (Linear-style scale 1/sqrt(fan_in)),
    # one (weight, bias) pair per nn.Linear of the original module.
    scale = 1.0 / jnp.sqrt(jnp.float32(MEM))

    def linear(k):
        kw, kb = jax.random.split(k)
        w = jax.random.uniform(kw, (MEM, MEM), jnp.float32, -scale, scale)
        bb = jax.random.uniform(kb, (MEM,), jnp.float32, -scale, scale)
        return w, bb

    ilh, irh = linear(ks[0]), linear(ks[1])
    lflh, lfrh = linear(ks[2]), linear(ks[3])
    rflh, rfrh = linear(ks[4]), linear(ks[5])
    ulh, urh = linear(ks[6]), linear(ks[7])

    wl, wr, bias = pack_composer_params(ilh, irh, lflh, lfrh, rflh, rfrh, ulh, urh)

    # bf16 state calling convention (halves state HBM traffic; math stays f32).
    lc = jax.random.normal(ks[8], (B, MEM), jnp.float32).astype(jnp.bfloat16)
    lh = jax.random.normal(ks[9], (B, MEM), jnp.float32).astype(jnp.bfloat16)
    rc = jax.random.normal(ks[10], (B, MEM), jnp.float32).astype(jnp.bfloat16)
    rh = jax.random.normal(ks[11], (B, MEM), jnp.float32).astype(jnp.bfloat16)

    c, h = binary_tree_composer(lc, lh, rc, rh, wl, wr, bias)
    jax.block_until_ready((c, h))

    c_ref, h_ref = reference(lc, lh, rc, rh, wl, wr, bias)
    # bf16 matmul operands / bf16 outputs -> relaxed tolerance (f32 internal math).
    assert jnp.allclose(c.astype(jnp.float32), c_ref, atol=5e-2, rtol=5e-2), "c mismatch"
    assert jnp.allclose(h.astype(jnp.float32), h_ref, atol=5e-2, rtol=5e-2), "h mismatch"

    print("KERNEL_OK")
</pallas_src>

<mosaic_0001>
module attributes {stable_mosaic.version = 11 : i64} {
  func.func @composer_kernel(%arg0: i32, %arg1: memref<8x128xbf16, #tpu.memory_space<vmem>>, %arg2: memref<8x128xbf16, #tpu.memory_space<vmem>>, %arg3: memref<8x128xbf16, #tpu.memory_space<vmem>>, %arg4: memref<8x128xbf16, #tpu.memory_space<vmem>>, %arg5: memref<128x512xbf16, #tpu.memory_space<vmem>>, %arg6: memref<128x512xbf16, #tpu.memory_space<vmem>>, %arg7: memref<1x512xf32, #tpu.memory_space<vmem>>, %arg8: memref<8x128xbf16, #tpu.memory_space<vmem>>, %arg9: memref<8x128xbf16, #tpu.memory_space<vmem>>) attributes {dimension_semantics = [#tpu.dimension_semantics<parallel>], iteration_bounds = array<i64: 1>, scalar_prefetch = 0 : i64, scratch_operands = 0 : i64, tpu.core_type = #tpu.core_type<tc>, window_params = [{transform_indices = @transform_0, window_bounds = array<i64: 8, 128>}, {transform_indices = @transform_1, window_bounds = array<i64: 8, 128>}, {transform_indices = @transform_2, window_bounds = array<i64: 8, 128>}, {transform_indices = @transform_3, window_bounds = array<i64: 8, 128>}, {pipeline_mode = #tpu.pipeline_mode<synchronous>, transform_indices = @transform_4, window_bounds = array<i64: 128, 512>}, {pipeline_mode = #tpu.pipeline_mode<synchronous>, transform_indices = @transform_5, window_bounds = array<i64: 128, 512>}, {pipeline_mode = #tpu.pipeline_mode<synchronous>, transform_indices = @transform_6, window_bounds = array<i64: 1, 512>}, {transform_indices = @transform_7, window_bounds = array<i64: 8, 128>}, {transform_indices = @transform_8, window_bounds = array<i64: 8, 128>}]} {
    %c0 = arith.constant 0 : index
    %c0_0 = arith.constant 0 : index
    %0 = vector.load %arg2[%c0, %c0_0] : memref<8x128xbf16, #tpu.memory_space<vmem>>, vector<8x128xbf16>
    %c0_1 = arith.constant 0 : index
    %c0_2 = arith.constant 0 : index
    %1 = vector.load %arg4[%c0_1, %c0_2] : memref<8x128xbf16, #tpu.memory_space<vmem>>, vector<8x128xbf16>
    %c0_3 = arith.constant 0 : index
    %c0_4 = arith.constant 0 : index
    %2 = vector.load %arg5[%c0_3, %c0_4] : memref<128x512xbf16, #tpu.memory_space<vmem>>, vector<128x512xbf16>
    %cst = arith.constant dense<0.000000e+00> : vector<8x512xf32>
    %3 = tpu.matmul %0, %2, %cst {dimension_numbers = #tpu.dot_dimension_numbers<[1], [0], [0], [1], [0, 0, 1, 1], [], []>} : vector<8x128xbf16>, vector<128x512xbf16>, vector<8x512xf32> -> vector<8x512xf32>
    %c0_5 = arith.constant 0 : index
    %c0_6 = arith.constant 0 : index
    %4 = vector.load %arg6[%c0_5, %c0_6] : memref<128x512xbf16, #tpu.memory_space<vmem>>, vector<128x512xbf16>
    %cst_7 = arith.constant dense<0.000000e+00> : vector<8x512xf32>
    %5 = tpu.matmul %1, %4, %cst_7 {dimension_numbers = #tpu.dot_dimension_numbers<[1], [0], [0], [1], [0, 0, 1, 1], [], []>} : vector<8x128xbf16>, vector<128x512xbf16>, vector<8x512xf32> -> vector<8x512xf32>
    %6 = arith.addf %3, %5 : vector<8x512xf32>
    %c0_8 = arith.constant 0 : index
    %c0_9 = arith.constant 0 : index
    %7 = vector.load %arg7[%c0_8, %c0_9] : memref<1x512xf32, #tpu.memory_space<vmem>>, vector<1x512xf32>
    %8 = vector.broadcast %7 : vector<1x512xf32> to vector<8x512xf32>
    %9 = arith.addf %6, %8 : vector<8x512xf32>
    %10 = vector.extract_strided_slice %9 {offsets = [0, 0], sizes = [8, 128], strides = [1, 1]} : vector<8x512xf32> to vector<8x128xf32>
    %cst_10 = arith.constant 5.000000e-01 : f32
    %11 = vector.broadcast %cst_10 : f32 to vector<8x128xf32>
    %12 = arith.mulf %11, %10 : vector<8x128xf32>
    %13 = math.tanh %12 : vector<8x128xf32>
    %cst_11 = arith.constant 5.000000e-01 : f32
    %14 = vector.broadcast %cst_11 : f32 to vector<8x128xf32>
    %15 = arith.mulf %14, %13 : vector<8x128xf32>
    %cst_12 = arith.constant 5.000000e-01 : f32
    %16 = vector.broadcast %cst_12 : f32 to vector<8x128xf32>
    %17 = arith.addf %15, %16 : vector<8x128xf32>
    %18 = vector.extract_strided_slice %9 {offsets = [0, 128], sizes = [8, 128], strides = [1, 1]} : vector<8x512xf32> to vector<8x128xf32>
    %cst_13 = arith.constant 5.000000e-01 : f32
    %19 = vector.broadcast %cst_13 : f32 to vector<8x128xf32>
    %20 = arith.mulf %19, %18 : vector<8x128xf32>
    %21 = math.tanh %20 : vector<8x128xf32>
    %cst_14 = arith.constant 5.000000e-01 : f32
    %22 = vector.broadcast %cst_14 : f32 to vector<8x128xf32>
    %23 = arith.mulf %22, %21 : vector<8x128xf32>
    %cst_15 = arith.constant 5.000000e-01 : f32
    %24 = vector.broadcast %cst_15 : f32 to vector<8x128xf32>
    %25 = arith.addf %23, %24 : vector<8x128xf32>
    %26 = vector.extract_strided_slice %9 {offsets = [0, 256], sizes = [8, 128], strides = [1, 1]} : vector<8x512xf32> to vector<8x128xf32>
    %cst_16 = arith.constant 5.000000e-01 : f32
    %27 = vector.broadcast %cst_16 : f32 to vector<8x128xf32>
    %28 = arith.mulf %27, %26 : vector<8x128xf32>
    %29 = math.tanh %28 : vector<8x128xf32>
    %cst_17 = arith.constant 5.000000e-01 : f32
    %30 = vector.broadcast %cst_17 : f32 to vector<8x128xf32>
    %31 = arith.mulf %30, %29 : vector<8x128xf32>
    %cst_18 = arith.constant 5.000000e-01 : f32
    %32 = vector.broadcast %cst_18 : f32 to vector<8x128xf32>
    %33 = arith.addf %31, %32 : vector<8x128xf32>
    %34 = vector.extract_strided_slice %9 {offsets = [0, 384], sizes = [8, 128], strides = [1, 1]} : vector<8x512xf32> to vector<8x128xf32>
    %35 = math.tanh %34 : vector<8x128xf32>
    %36 = arith.mulf %17, %35 : vector<8x128xf32>
    %c0_19 = arith.constant 0 : index
    %c0_20 = arith.constant 0 : index
    %37 = vector.load %arg1[%c0_19, %c0_20] : memref<8x128xbf16, #tpu.memory_space<vmem>>, vector<8x128xbf16>
    %38 = arith.extf %37 : vector<8x128xbf16> to vector<8x128xf32>
    %39 = arith.mulf %25, %38 : vector<8x128xf32>
    %40 = arith.addf %36, %39 : vector<8x128xf32>
    %c0_21 = arith.constant 0 : index
    %c0_22 = arith.constant 0 : index
    %41 = vector.load %arg3[%c0_21, %c0_22] : memref<8x128xbf16, #tpu.memory_space<vmem>>, vector<8x128xbf16>
    %42 = arith.extf %41 : vector<8x128xbf16> to vector<8x128xf32>
    %43 = arith.mulf %33, %42 : vector<8x128xf32>
    %44 = arith.addf %40, %43 : vector<8x128xf32>
    %45 = arith.truncf %44 : vector<8x128xf32> to vector<8x128xbf16>
    %c0_23 = arith.constant 0 : index
    %c0_24 = arith.constant 0 : index
    %46 = vector.load %arg8[%c0_23, %c0_24] : memref<8x128xbf16, #tpu.memory_space<vmem>>, vector<8x128xbf16>
    tpu.vector_store %arg8[%c0_23, %c0_24], %45 {strides = array<i32>} : memref<8x128xbf16, #tpu.memory_space<vmem>>, vector<8x128xbf16>,
    %47 = math.tanh %44 : vector<8x128xf32>
    %48 = arith.truncf %47 : vector<8x128xf32> to vector<8x128xbf16>
    %c0_25 = arith.constant 0 : index
    %c0_26 = arith.constant 0 : index
    %49 = vector.load %arg9[%c0_25, %c0_26] : memref<8x128xbf16, #tpu.memory_space<vmem>>, vector<8x128xbf16>
    tpu.vector_store %arg9[%c0_25, %c0_26], %48 {strides = array<i32>} : memref<8x128xbf16, #tpu.memory_space<vmem>>, vector<8x128xbf16>,
    return
  }
  func.func @transform_0(%arg0: i32) -> (i32, i32) {
    %c0_i32 = arith.constant 0 : i32
    %c0_i32_0 = arith.constant 0 : i32
    return %arg0, %c0_i32 : i32, i32
  }
  func.func @transform_1(%arg0: i32) -> (i32, i32) {
    %c0_i32 = arith.constant 0 : i32
    %c0_i32_0 = arith.constant 0 : i32
    return %arg0, %c0_i32 : i32, i32
  }
  func.func @transform_2(%arg0: i32) -> (i32, i32) {
    %c0_i32 = arith.constant 0 : i32
    %c0_i32_0 = arith.constant 0 : i32
    return %arg0, %c0_i32 : i32, i32
  }
  func.func @transform_3(%arg0: i32) -> (i32, i32) {
    %c0_i32 = arith.constant 0 : i32
    %c0_i32_0 = arith.constant 0 : i32
    return %arg0, %c0_i32 : i32, i32
  }
  func.func @transform_4(%arg0: i32) -> (i32, i32) {
    %c0_i32 = arith.constant 0 : i32
    %c0_i32_0 = arith.constant 0 : i32
    %c0_i32_1 = arith.constant 0 : i32
    return %c0_i32, %c0_i32_0 : i32, i32
  }
  func.func @transform_5(%arg0: i32) -> (i32, i32) {
    %c0_i32 = arith.constant 0 : i32
    %c0_i32_0 = arith.constant 0 : i32
    %c0_i32_1 = arith.constant 0 : i32
    return %c0_i32, %c0_i32_0 : i32, i32
  }
  func.func @transform_6(%arg0: i32) -> (i32, i32) {
    %c0_i32 = arith.constant 0 : i32
    %c0_i32_0 = arith.constant 0 : i32
    %c0_i32_1 = arith.constant 0 : i32
    return %c0_i32, %c0_i32_0 : i32, i32
  }
  func.func @transform_7(%arg0: i32) -> (i32, i32) {
    %c0_i32 = arith.constant 0 : i32
    %c0_i32_0 = arith.constant 0 : i32
    return %arg0, %c0_i32 : i32, i32
  }
  func.func @transform_8(%arg0: i32) -> (i32, i32) {
    %c0_i32 = arith.constant 0 : i32
    %c0_i32_0 = arith.constant 0 : i32
    return %arg0, %c0_i32 : i32, i32
  }
}

</mosaic_0001>

<bundles_post_ra>
// kernel: binary_tree_composer.1
= control target key start
LH: loop header
LB: loop body
LE: loop exit
PB: predicated region body
PF: predicated region fallthrough
CT: control target
= control target key end

     0   :  { %14 = vsyncpa [#allocation3], 0  ;;  %v883_v2 = vmov 0   ;;  %s1166_s0 = inlined_call_operand.vmem [shape: bf16[8,128], index: 0, kind: input, shape index: {}]   ;;  %s1167_s1 = inlined_call_operand.vmem [shape: bf16[8,128], index: 1, kind: input, shape index: {}]   ;;  %s1168_s2 = inlined_call_operand.vmem [shape: bf16[8,128], index: 2, kind: input, shape index: {}]   ;;  %s1169_s3 = inlined_call_operand.vmem [shape: bf16[8,128], index: 3, kind: input, shape index: {}]   ;;  %s1170_s4 = inlined_call_operand.vmem [shape: bf16[128,512], index: 4, kind: input, shape index: {}]   ;;  %s1171_s5 = inlined_call_operand.vmem [shape: bf16[128,512], index: 5, kind: input, shape index: {}]   ;;  %s1172_s6 = inlined_call_operand.vmem [shape: f32[1,512], index: 6, kind: input, shape index: {}]   ;;  %s1173_s7 = inlined_call_operand.hbm [shape: bf16[8,128], index: 7, kind: output, shape index: {0}]   ;;  %s1174_s8 = inlined_call_operand.hbm [shape: bf16[8,128], index: 8, kind: output, shape index: {1}]  }
   0x1   :  { %v729_v0 = vld [vmem:[%s1171_s5 + $0x4] ss:$16 sps:$4 sm:$0xff]   ;;  %v731_v1 = vld [vmem:[%s1171_s5 + $0xc] ss:$16 sps:$4 sm:$0xff]   ;;  %289 = vmatprep.mubr.bf16.mxu0 %v883_v2  ;;  %330 = vmatprep.mubr.bf16.mxu1 %v883_v2  ;;  %v733_v3 = vld [vmem:[%s1171_s5] ss:$16 sps:$4 sm:$0xff]  }
   0x2   :  { %257 = vmatprep.subr.bf16.mxu0 %v729_v0  ;;  %v734_v4 = vld [vmem:[%s1171_s5 + $0x8] ss:$16 sps:$4 sm:$0xff]   ;;  %298 = vmatprep.subr.bf16.mxu1 %v731_v1  ;;  %v735_v5 = vld [vmem:[%s1171_s5 + $0x24] ss:$16 sps:$4 sm:$0xff]   ;;  %v737_v6 = vld [vmem:[%s1171_s5 + $0x2c] ss:$16 sps:$4 sm:$0xff]  }
   0x3   :  { %258 = vmatpush1.bf16.msra.mxu0 %v733_v3  ;;  %299 = vmatpush1.bf16.msra.mxu1 %v734_v4  ;;  %v739_v7 = vld [vmem:[%s1171_s5 + $0x20] ss:$16 sps:$4 sm:$0xff]   ;;  %v740_v8 = vld [vmem:[%s1171_s5 + $0x28] ss:$16 sps:$4 sm:$0xff]   ;;  %v741_v9 = vld [vmem:[%s1171_s5 + $0x44] ss:$16 sps:$4 sm:$0xff]  }
   0x4   :  { %259 = vmatprep.subr.bf16.mxu0 %v735_v5  ;;  %300 = vmatprep.subr.bf16.mxu1 %v737_v6  ;;  %v743_v10 = vld [vmem:[%s1171_s5 + $0x4c] ss:$16 sps:$4 sm:$0xff]   ;;  %v745_v11 = vld [vmem:[%s1171_s5 + $0x40] ss:$16 sps:$4 sm:$0xff]   ;;  %v746_v12 = vld [vmem:[%s1171_s5 + $0x48] ss:$16 sps:$4 sm:$0xff]  }
   0x5   :  { %v747_v13 = vld [vmem:[%s1171_s5 + $0x64] ss:$16 sps:$4 sm:$0xff]   ;;  %v749_v14 = vld [vmem:[%s1171_s5 + $0x6c] ss:$16 sps:$4 sm:$0xff]   ;;  %v751_v15 = vld [vmem:[%s1171_s5 + $0x60] ss:$16 sps:$4 sm:$0xff]  }
   0x6   :  { %v752_v16 = vld [vmem:[%s1171_s5 + $0x68] ss:$16 sps:$4 sm:$0xff]   ;;  %v753_v17 = vld [vmem:[%s1171_s5 + $0x84] ss:$16 sps:$4 sm:$0xff]   ;;  %v755_v18 = vld [vmem:[%s1171_s5 + $0x8c] ss:$16 sps:$4 sm:$0xff]  }
   0x7   :  { %260 = vmatpush1.bf16.msra.mxu0 %v739_v7  ;;  %301 = vmatpush1.bf16.msra.mxu1 %v740_v8  ;;  %v757_v19 = vld [vmem:[%s1171_s5 + $0x80] ss:$16 sps:$4 sm:$0xff]   ;;  %v758_v20 = vld [vmem:[%s1171_s5 + $0x88] ss:$16 sps:$4 sm:$0xff]   ;;  %v759_v21 = vld [vmem:[%s1171_s5 + $0xa4] ss:$16 sps:$4 sm:$0xff]  }
   0x8   :  { %261 = vmatprep.subr.bf16.mxu0 %v741_v9  ;;  %302 = vmatprep.subr.bf16.mxu1 %v743_v10  ;;  %v761_v22 = vld [vmem:[%s1171_s5 + $0xac] ss:$16 sps:$4 sm:$0xff]   ;;  %v763_v23 = vld [vmem:[%s1171_s5 + $0xa0] ss:$16 sps:$4 sm:$0xff]   ;;  %v764_v24 = vld [vmem:[%s1171_s5 + $0xa8] ss:$16 sps:$4 sm:$0xff]  }
   0x9   :  { %v765_v25 = vld [vmem:[%s1171_s5 + $0xc4] ss:$16 sps:$4 sm:$0xff]   ;;  %v767_v26 = vld [vmem:[%s1171_s5 + $0xcc] ss:$16 sps:$4 sm:$0xff]   ;;  %v769_v27 = vld [vmem:[%s1171_s5 + $0xc0] ss:$16 sps:$4 sm:$0xff]  }
   0xa   :  { %v770_v28 = vld [vmem:[%s1171_s5 + $0xc8] ss:$16 sps:$4 sm:$0xff]   ;;  %v771_v29 = vld [vmem:[%s1171_s5 + $0xe4] ss:$16 sps:$4 sm:$0xff]   ;;  %v773_v30 = vld [vmem:[%s1171_s5 + $0xec] ss:$16 sps:$4 sm:$0xff]  }
   0xb   :  { %262 = vmatpush1.bf16.msra.mxu0 %v745_v11  ;;  %303 = vmatpush1.bf16.msra.mxu1 %v746_v12  ;;  %v775_v31 = vld [vmem:[%s1171_s5 + $0xe0] ss:$16 sps:$4 sm:$0xff]   ;;  %v776_v32 = vld [vmem:[%s1171_s5 + $0xe8] ss:$16 sps:$4 sm:$0xff]   ;;  %v779_v33 = vld [vmem:[%s1170_s4 + $0x4] ss:$16 sps:$4 sm:$0xff]  }
   0xc   :  { %263 = vmatprep.subr.bf16.mxu0 %v747_v13  ;;  %304 = vmatprep.subr.bf16.mxu1 %v749_v14  ;;  %v782_v34 = vld [vmem:[%s1170_s4 + $0xc] ss:$16 sps:$4 sm:$0xff]   ;;  %v32_v35 = vld [vmem:[%s1169_s3] sm:$0xf]  ;;  %v780_v37 = vld [vmem:[%s1170_s4 + $0x8] ss:$16 sps:$4 sm:$0xff]  }
   0xd   :  { %v777_v36 = vld [vmem:[%s1170_s4] ss:$16 sps:$4 sm:$0xff]   ;;  %v785_v38 = vld [vmem:[%s1170_s4 + $0x24] ss:$16 sps:$4 sm:$0xff]   ;;  %v788_v39 = vld [vmem:[%s1170_s4 + $0x2c] ss:$16 sps:$4 sm:$0xff]  }
   0xe   :  { %v783_v40 = vld [vmem:[%s1170_s4 + $0x20] ss:$16 sps:$4 sm:$0xff]   ;;  %v786_v41 = vld [vmem:[%s1170_s4 + $0x28] ss:$16 sps:$4 sm:$0xff]   ;;  %v791_v42 = vld [vmem:[%s1170_s4 + $0x44] ss:$16 sps:$4 sm:$0xff]  }
   0xf   :  { %264 = vmatpush1.bf16.msra.mxu0 %v751_v15  ;;  %305 = vmatpush1.bf16.msra.mxu1 %v752_v16  ;;  %v794_v43 = vld [vmem:[%s1170_s4 + $0x4c] ss:$16 sps:$4 sm:$0xff]   ;;  %v789_v44 = vld [vmem:[%s1170_s4 + $0x40] ss:$16 sps:$4 sm:$0xff]   ;;  %v792_v45 = vld [vmem:[%s1170_s4 + $0x48] ss:$16 sps:$4 sm:$0xff]  }
  0x10   :  { %265 = vmatprep.subr.bf16.mxu0 %v753_v17  ;;  %306 = vmatprep.subr.bf16.mxu1 %v755_v18  ;;  %v797_v46 = vld [vmem:[%s1170_s4 + $0x64] ss:$16 sps:$4 sm:$0xff]   ;;  %v800_v47 = vld [vmem:[%s1170_s4 + $0x6c] ss:$16 sps:$4 sm:$0xff]  }
  0x13   :  { %266 = vmatpush1.bf16.msra.mxu0 %v757_v19  ;;  %307 = vmatpush1.bf16.msra.mxu1 %v758_v20 }
  0x14   :  { %267 = vmatprep.subr.bf16.mxu0 %v759_v21  ;;  %308 = vmatprep.subr.bf16.mxu1 %v761_v22 }
  0x17   :  { %268 = vmatpush1.bf16.msra.mxu0 %v763_v23  ;;  %309 = vmatpush1.bf16.msra.mxu1 %v764_v24 }
  0x18   :  { %269 = vmatprep.subr.bf16.mxu0 %v765_v25  ;;  %310 = vmatprep.subr.bf16.mxu1 %v767_v26 }
  0x1b   :  { %270 = vmatpush1.bf16.msra.mxu0 %v769_v27  ;;  %311 = vmatpush1.bf16.msra.mxu1 %v770_v28 }
  0x1c   :  { %271 = vmatprep.subr.bf16.mxu0 %v771_v29  ;;  %312 = vmatprep.subr.bf16.mxu1 %v773_v30 }
  0x1f   :  { %272 = vmatpush1.bf16.msra.mxu0 %v775_v31  ;;  %313 = vmatpush1.bf16.msra.mxu1 %v776_v32 }
  0x20   :  { %499 = vmatprep.subr.bf16.mxu0 %v779_v33  ;;  %540 = vmatprep.subr.bf16.mxu1 %v782_v34 }
  0x22   :  { %290 = vmatmul.mubr.bf16.vlgmr.msra.gmra.mrb[0].mxu0 %v32_v35  ;;  %331 = vmatmul.mubr.bf16.vlgmr.msra.gmra.mrb[0].mxu1 %v32_v35 }
  0x23   :  { %500 = vmatpush1.bf16.msra.mxu0 %v777_v36  ;;  %541 = vmatpush1.bf16.msra.mxu1 %v780_v37 }
  0x24   :  { %501 = vmatprep.subr.bf16.mxu0 %v785_v38  ;;  %542 = vmatprep.subr.bf16.mxu1 %v788_v39 }
  0x25   :  { %531 = vmatprep.mubr.bf16.mxu0 %v883_v2  ;;  %572 = vmatprep.mubr.bf16.mxu1 %v883_v2 }
  0x27   :  { %502 = vmatpush1.bf16.msra.mxu0 %v783_v40  ;;  %543 = vmatpush1.bf16.msra.mxu1 %v786_v41 }
  0x28   :  { %503 = vmatprep.subr.bf16.mxu0 %v791_v42  ;;  %544 = vmatprep.subr.bf16.mxu1 %v794_v43 }
  0x29   :  { %15 = vsyncpa [#allocation5], 0  ;;  %v795_v48 = vld [vmem:[%s1170_s4 + $0x60] ss:$16 sps:$4 sm:$0xff]   ;;  %v798_v49 = vld [vmem:[%s1170_s4 + $0x68] ss:$16 sps:$4 sm:$0xff]   ;;  %v583_v11 = vlaneseq }
  0x2a   :  { %v803_v50 = vld [vmem:[%s1170_s4 + $0x84] ss:$16 sps:$4 sm:$0xff]   ;;  %v806_v51 = vld [vmem:[%s1170_s4 + $0x8c] ss:$16 sps:$4 sm:$0xff]   ;;  %v801_v52 = vld [vmem:[%s1170_s4 + $0x80] ss:$16 sps:$4 sm:$0xff]  }
  0x2b   :  { %504 = vmatpush1.bf16.msra.mxu0 %v789_v44  ;;  %545 = vmatpush1.bf16.msra.mxu1 %v792_v45  ;;  %v804_v53 = vld [vmem:[%s1170_s4 + $0x88] ss:$16 sps:$4 sm:$0xff]   ;;  %v809_v54 = vld [vmem:[%s1170_s4 + $0xa4] ss:$16 sps:$4 sm:$0xff]   ;;  %v812_v55 = vld [vmem:[%s1170_s4 + $0xac] ss:$16 sps:$4 sm:$0xff]  }
  0x2c   :  { %505 = vmatprep.subr.bf16.mxu0 %v797_v46  ;;  %546 = vmatprep.subr.bf16.mxu1 %v800_v47  ;;  %v807_v56 = vld [vmem:[%s1170_s4 + $0xa0] ss:$16 sps:$4 sm:$0xff]   ;;  %v810_v57 = vld [vmem:[%s1170_s4 + $0xa8] ss:$16 sps:$4 sm:$0xff]   ;;  %v815_v58 = vld [vmem:[%s1170_s4 + $0xc4] ss:$16 sps:$4 sm:$0xff]  }
  0x2d   :  { %v818_v59 = vld [vmem:[%s1170_s4 + $0xcc] ss:$16 sps:$4 sm:$0xff]   ;;  %v813_v60 = vld [vmem:[%s1170_s4 + $0xc0] ss:$16 sps:$4 sm:$0xff]   ;;  %v816_v61 = vld [vmem:[%s1170_s4 + $0xc8] ss:$16 sps:$4 sm:$0xff]  }
  0x2e   :  { %v821_v62 = vld [vmem:[%s1170_s4 + $0xe4] ss:$16 sps:$4 sm:$0xff]   ;;  %v824_v63 = vld [vmem:[%s1170_s4 + $0xec] ss:$16 sps:$4 sm:$0xff]   ;;  %v819_v0 = vld [vmem:[%s1170_s4 + $0xe0] ss:$16 sps:$4 sm:$0xff]  }
  0x2f   :  { %506 = vmatpush1.bf16.msra.mxu0 %v795_v48  ;;  %547 = vmatpush1.bf16.msra.mxu1 %v798_v49  ;;  %v822_v1 = vld [vmem:[%s1170_s4 + $0xe8] ss:$16 sps:$4 sm:$0xff]   ;;  %v31_v2 = vld [vmem:[%s1167_s1] sm:$0xf]  ;;  %v584_v12 = vshrl.u32 %v583_v11, 7 }
  0x30   :  { %507 = vmatprep.subr.bf16.mxu0 %v803_v50  ;;  %548 = vmatprep.subr.bf16.mxu1 %v806_v51  ;;  %v581_v15 = vld [vmem:[%s1172_s6] sm:$0xf] }
  0x31   :  { %v585_v13 = vsub.s32 0, %v584_v12  ;;  %v593_v14 = vsub.s32 2, %v584_v12  ;;  %v589_v16 = vsub.s32 1, %v584_v12  ;;  %v597_v19 = vsub.s32 3, %v584_v12  ;;  %v621_v42 = vld [vmem:[%s1166_s0] sm:$0xf] }
  0x32   :  { %v625_v47 = vld [vmem:[%s1168_s2] sm:$0xf]  ;;  %v622_v50 = vunpack.c.l.bf16 %v621_v42  ;;  %s884_s0 = smov [#allocation2]  }
  0x33   :  { %508 = vmatpush1.bf16.msra.mxu0 %v801_v52  ;;  %549 = vmatpush1.bf16.msra.mxu1 %v804_v53  ;;  %v586_v17 = vrot.slane %v581_v15, %v585_v13  ;;  %v594_v18 = vrot.slane %v581_v15, %v593_v14  ;;  %v590_v22 = vrot.slane %v581_v15, %v589_v16  ;;  %s640_s24 = sshll.u32 %s884_s0, 4  ;;  %s641_s24 = int_to_ptr.vmem [resolvable:$true] %s640_s24 }
  0x34   :  { %509 = vmatprep.subr.bf16.mxu0 %v809_v54  ;;  %550 = vmatprep.subr.bf16.mxu1 %v812_v55  ;;  %v598_v33 = vrot.slane %v581_v15, %v597_v19  ;;  %v626_v55 = vunpack.c.l.bf16 %v625_v47  ;;  %s835_s25 = scalar_lea.vmem %s641_s24, 64  ;;  %p840_p1 = scmp.lt.s32.totalorder %s641_s24, %s641_s24 }
  0x35   :  { %p836_p0 = scmp.ne.s32.totalorder %s641_s24, %s835_s25  ;;  %p841_p2 = scmp.lt.s32.totalorder %s835_s25, %s835_s25 }
  0x37   :  { %510 = vmatpush1.bf16.msra.mxu0 %v807_v56  ;;  %551 = vmatpush1.bf16.msra.mxu1 %v810_v57  ;;  %p842_p3 = por %p841_p2, %p840_p1 }
  0x38   :  { %511 = vmatprep.subr.bf16.mxu0 %v815_v58  ;;  %552 = vmatprep.subr.bf16.mxu1 %v818_v59 }
  0x39   :  { %p843_p4 = pnand %p842_p3, %p836_p0 }
  0x3b   :  { %512 = vmatpush1.bf16.msra.mxu0 %v813_v60  ;;  %553 = vmatpush1.bf16.msra.mxu1 %v816_v61 }
  0x3c   :  { %513 = vmatprep.subr.bf16.mxu0 %v821_v62  ;;  %554 = vmatprep.subr.bf16.mxu1 %v824_v63 }
  0x3f   :  { %514 = vmatpush1.bf16.msra.mxu0 %v819_v0  ;;  %555 = vmatpush1.bf16.msra.mxu1 %v822_v1 }
  0x42   :  { %532 = vmatmul.mubr.bf16.vlgmr.msra.gmra.mrb[4].mxu0 %v31_v2  ;;  %573 = vmatmul.mubr.bf16.vlgmr.msra.gmra.mrb[4].mxu1 %v31_v2 }
  0xf5   :  { %v291_v3 = vpop.f32.mrb[0].mxu0  ;;  %v332_v4 = vpop.f32.mrb[0].mxu1 }
  0xf6   :  { %v293_v5 = vpop.f32.mrb[1].mxu0  ;;  %v334_v6 = vpop.f32.mrb[1].mxu1 }
  0xf7   :  { %v295_v7 = vpop.f32.mrb[2].mxu0  ;;  %v336_v8 = vpop.f32.mrb[2].mxu1 }
  0xf8   :  { %v296_v9 = vpop.f32.mrb[3].mxu0  ;;  %v337_v10 = vpop.f32.mrb[3].mxu1 }
 0x115   :  { %v533_v20 = vpop.f32.mrb[4].mxu0  ;;  %v574_v21 = vpop.f32.mrb[4].mxu1 }
 0x116   :  { %v534_v23 = vadd.f32 %v533_v20, %v291_v3  ;;  %v575_v24 = vadd.f32 %v574_v21, %v332_v4  ;;  %v535_v25 = vpop.f32.mrb[5].mxu0  ;;  %v576_v26 = vpop.f32.mrb[5].mxu1 }
 0x117   :  { %v536_v27 = vadd.f32 %v535_v25, %v293_v5  ;;  %v577_v28 = vadd.f32 %v576_v26, %v334_v6  ;;  %v537_v29 = vpop.f32.mrb[6].mxu0  ;;  %v578_v30 = vpop.f32.mrb[6].mxu1 }
 0x118   :  { %v603_v31 = vadd.f32 %v586_v17, %v534_v23  ;;  %v605_v32 = vadd.f32 %v594_v18, %v575_v24  ;;  %v538_v34 = vpop.f32.mrb[7].mxu0  ;;  %v579_v35 = vpop.f32.mrb[7].mxu1 }
 0x119   :  { %v604_v36 = vadd.f32 %v590_v22, %v536_v27  ;;  %v606_v40 = vadd.f32 %v598_v33, %v577_v28 }
 0x11a   :  { %v607_v37 = vmul.f32 0.5, %v603_v31  ;;  %v615_v38 = vmul.f32 0.5, %v605_v32 }
 0x11b   :  { %v611_v39 = vmul.f32 0.5, %v604_v36 }
 0x11c   :  { %825 = vtanh.f32 %v607_v37 }
 0x11d   :  { %827 = vtanh.f32 %v615_v38 }
 0x11e   :  { %829 = vtanh.f32 %v611_v39 }
 0x11f   :  { %831 = vtanh.f32 %v606_v40 }
 0x126   :  { %v826_v41 = vpop.eup %825 }
 0x127   :  { %v828_v43 = vpop.eup %827  ;;  %v609_v44 = vmul.f32 0.5, %v826_v41 }
 0x128   :  { %v830_v45 = vpop.eup %829  ;;  %v617_v46 = vmul.f32 0.5, %v828_v43 }
 0x129   :  { %v610_v48 = vadd.f32 0.5, %v609_v44  ;;  %v613_v49 = vmul.f32 0.5, %v830_v45  ;;  %v832_v51 = vpop.eup %831 }
 0x12a   :  { %v618_v52 = vadd.f32 0.5, %v617_v46 }
 0x12b   :  { %v614_v53 = vadd.f32 0.5, %v613_v49  ;;  %v620_v54 = vmul.f32 %v832_v51, %v610_v48 }
 0x12c   :  { %v627_v58 = vmul.f32 %v626_v55, %v618_v52 }
 0x12d   :  { %v623_v56 = vmul.f32 %v622_v50, %v614_v53 }
 0x12f   :  { %v624_v57 = vadd.f32 %v623_v56, %v620_v54 }
 0x131   :  { %v628_v59 = vadd.f32 %v627_v58, %v624_v57 }
 0x133   :  { %v629_v60 = vpack.c.bf16 %v628_v59, %v628_v59  ;;  %833 = vtanh.f32 %v628_v59 }
 0x135   :  { %630 = vst [vmem:[#allocation2] sm:$0xf] %v629_v60 }
 0x136   :  { %846 = shalt.err (!%p843_p4)
}
 0x137   :  { %s847_s27 = scalar_lea.hbm %s1173_s7, 64 }
 0x138   :  { %p848_p5 = scmp.ne.s32.totalorder %s1173_s7, %s847_s27  ;;  %p851_p6 = scmp.lt.u32.totalorder %s847_s27, %s1173_s7 }
 0x13a   :  { %p853_p7 = pnand %p851_p6, %p848_p5 }
 0x13c   :  { %856 = shalt.err (!%p853_p7)
}
 0x13d   :  { %643 = dma.vmem_to_hbm [thread:$0]  %s641_s24, 64, %s1173_s7, [#allocation3]   ;;  %v834_v61 = vpop.eup %833 }
 0x13e   :  { %s885_s11 = smov [#allocation4]   ;;  %v632_v62 = vpack.c.bf16 %v834_v61, %v834_v61 }
 0x13f   :  { %s650_s12 = sshll.u32 %s885_s11, 4  ;;  %s651_s12 = int_to_ptr.vmem [resolvable:$true] %s650_s12 }
 0x140   :  { %633 = vst [vmem:[#allocation4] sm:$0xf] %v632_v62  ;;  %s857_s13 = scalar_lea.vmem %s651_s12, 64  ;;  %p862_p9 = scmp.lt.s32.totalorder %s651_s12, %s651_s12 }
 0x141   :  { %p858_p8 = scmp.ne.s32.totalorder %s651_s12, %s857_s13  ;;  %p863_p10 = scmp.lt.s32.totalorder %s857_s13, %s857_s13 }
 0x143   :  { %p864_p11 = por %p863_p10, %p862_p9 }
 0x145   :  { %p865_p12 = pnand %p864_p11, %p858_p8 }
 0x147   :  { %868 = shalt.err (!%p865_p12)
}
 0x148   :  { %s869_s3 = scalar_lea.hbm %s1174_s8, 64 }
 0x149   :  { %p870_p13 = scmp.ne.s32.totalorder %s1174_s8, %s869_s3  ;;  %p873_p0 = scmp.lt.u32.totalorder %s869_s3, %s1174_s8 }
 0x14b   :  { %p875_p1 = pnand %p873_p0, %p870_p13 }
 0x14d   :  { %878 = shalt.err (!%p875_p1)
}
 0x14e   :  { %653 = dma.vmem_to_hbm [thread:$0]  %s651_s12, 64, %s1174_s8, [#allocation5]  }
 0x14f   :  { %879 = dma.done.wait [#allocation3], 64  }
 0x150   :  { %880 = vsyncadd [#allocation3], 4294967232 }
 0x151   :  { %881 = dma.done.wait [#allocation5], 64  }
 0x152   :  { %882 = vsyncadd [#allocation5], 4294967232 }
 0x153   :  { %660 = vsyncpa [#allocation3], 1 }
 0x154   :  { %661 = vsyncpa [#allocation5], 1 }

</bundles_post_ra>
